<compile_context>
chip_gen: v7x
topology: tpu7x:2x2x1
jax: 0.10.0
libtpu: 0.0.40
codegen_flags: <defaults>
</compile_context>

<pallas_src>
import functools
import math

import jax
import jax.numpy as jnp
from jax import lax
from jax.experimental import pallas as pl
from jax.experimental.pallas import tpu as pltpu


def _sdpa_kernel(mask_ref, q_ref, k_ref, v_ref, out_ref, attn_ref, *,
                 scale, compute_dtype):
    # One (batch, head, q-tile) per grid step; the full key axis stays resident
    # in VMEM so the softmax over keys is exact (the module returns the full
    # attention matrix anyway, so flash-style rescaling buys nothing here).
    q = q_ref[...]            # (TQ, d_k)
    k = k_ref[...]            # (S_k, d_k)
    v = v_ref[...]            # (S_k, d_v)

    # Fold 1/sqrt(d_k) into Q: TQ*d_k multiplies instead of TQ*S_k.
    q = q * jnp.asarray(scale, dtype=q.dtype)
    if compute_dtype is not None:          # optional bf16 MXU path
        q = q.astype(compute_dtype)
        k = k.astype(compute_dtype)

    # Q @ K^T as an NT contraction on the MXU (contract last dims of both
    # operands; no k transpose through the XLU).
    scores = lax.dot_general(q, k, (((1,), (1,)), ((), ())),
                             preferred_element_type=jnp.float32)

    # QK[:, :, mask] = -999999999.0 (mask nonzero = disallowed). Compare the
    # int8 tile directly — no extra f32 cast pass over the score tile.
    masked = jnp.where(mask_ref[...] != 0, jnp.float32(-999999999.0), scores)

    # Numerically stable softmax over keys, exact normalization: one f32 divide
    # per query row + a broadcast multiply (matches F.softmax numerics).
    m = jnp.max(masked, axis=-1, keepdims=True)
    e = jnp.exp(masked - m)
    denom = jnp.sum(e, axis=-1, keepdims=True)
    p = e * (1.0 / denom)

    attn_ref[...] = p.astype(attn_ref.dtype)

    pv_dtype = v.dtype if compute_dtype is None else compute_dtype
    out_ref[...] = jnp.dot(p.astype(pv_dtype), v.astype(pv_dtype),
                           preferred_element_type=jnp.float32).astype(out_ref.dtype)


def _round_up(x, m):
    return ((x + m - 1) // m) * m


def _vmem_capacity_bytes():
    try:
        cap = int(pltpu.get_tpu_info().vmem_capacity_bytes)
        if cap > 0:
            return cap
    except Exception:
        pass
    return 64 << 20  # conservative default (v7x per-core VMEM)


def _working_set_bytes(tq, sk, dk, dv, q_itemsize, attn_itemsize):
    """VMEM bytes for one grid step, double-buffered, with layout padding."""
    lanes_k = _round_up(dk, 128)
    lanes_v = _round_up(dv, 128)
    lanes_s = _round_up(sk, 128)
    sub_q = _round_up(tq, 8)
    sub_k = _round_up(sk, 8)
    q_tile = sub_q * lanes_k * q_itemsize
    k_tile = sub_k * lanes_k * q_itemsize
    v_tile = sub_k * lanes_v * q_itemsize
    mask_tile = _round_up(tq, 32) * lanes_s * 1       # int8 packs 32 sublanes
    out_tile = sub_q * lanes_v * q_itemsize
    attn_tile = sub_q * lanes_s * attn_itemsize
    return 2 * (q_tile + k_tile + v_tile + mask_tile + out_tile + attn_tile)


def _choose_tq(sq, sk, dk, dv, q_itemsize, attn_itemsize, budget, prefer_split):
    # Largest q-tile dividing Sq whose double-buffered working set fits the
    # generation-aware budget; multiples of 32 preferred (int8 mask packing).
    cands = [t for t in (1024, 512, 256, 128, 64, 32, 16, 8) if sq % t == 0]
    if not cands:
        return sq  # tiny / ragged Sq: single full block
    ok = [t for t in cands
          if _working_set_bytes(t, sk, dk, dv, q_itemsize, attn_itemsize) <= budget]
    if not ok:
        return cands[-1]
    if prefer_split:  # B*H == 1: keep >= 2 q-tiles so both TCs have work (v7x)
        split = [t for t in ok if sq // t >= 2]
        if split:
            return split[0]
    return ok[0]


def scaled_dot_product_attention(Q, K, V, mask, *, q_block_size=None,
                                 attn_dtype=None, compute_dtype=None):
    """Q,K,V: [B,H,S,D]; mask: bool [S_q,S_k] (True = masked out).

    Returns (output [B,H,S_q,d_v], attention_score [B,H,S_q,S_k]).
    attn_dtype: dtype of the attention-probability output (default Q.dtype;
        pass jnp.bfloat16 to halve the dominant O(S^2) HBM writeback).
    compute_dtype: optional matmul operand dtype (e.g. jnp.bfloat16) with f32
        accumulation; default None keeps the input dtype (f32-faithful)."""
    B, H, Sq, dk = Q.shape
    Sk = K.shape[2]
    dv = V.shape[3]
    q_itemsize = jnp.dtype(Q.dtype).itemsize
    attn_dtype = Q.dtype if attn_dtype is None else jnp.dtype(attn_dtype)
    attn_itemsize = jnp.dtype(attn_dtype).itemsize

    capacity = _vmem_capacity_bytes()
    budget = (capacity * 3) // 4   # ~96 MiB on v5e/v6e (128 MiB), ~48 MiB on v7x

    if q_block_size is None:
        tq = _choose_tq(Sq, Sk, dk, dv, q_itemsize, attn_itemsize, budget,
                        prefer_split=(B * H == 1))
    else:
        tq = q_block_size
    assert Sq % tq == 0, "q_block_size must divide Sq"

    mask_i8 = mask.astype(jnp.int8)  # 4x smaller HBM->VMEM DMA than int32

    ws = _working_set_bytes(tq, Sk, dk, dv, q_itemsize, attn_itemsize)
    vmem_limit = int(max(32 << 20, min(capacity, ws + (8 << 20))))

    kernel = functools.partial(_sdpa_kernel,
                               scale=1.0 / math.sqrt(dk),
                               compute_dtype=compute_dtype)

    out_shapes = (
        jax.ShapeDtypeStruct((B, H, Sq, dv), Q.dtype),
        jax.ShapeDtypeStruct((B, H, Sq, Sk), attn_dtype),
    )

    return pl.pallas_call(
        kernel,
        out_shape=out_shapes,
        grid_spec=pltpu.PrefetchScalarGridSpec(
            num_scalar_prefetch=0,
            grid=(B, H, Sq // tq),
            in_specs=[
                pl.BlockSpec((tq, Sk), lambda b, h, qi: (qi, 0)),                 # mask (shared over b,h)
                pl.BlockSpec((None, None, tq, dk), lambda b, h, qi: (b, h, qi, 0)),  # Q tile
                pl.BlockSpec((None, None, Sk, dk), lambda b, h, qi: (b, h, 0, 0)),   # K (full key axis)
                pl.BlockSpec((None, None, Sk, dv), lambda b, h, qi: (b, h, 0, 0)),   # V (full key axis)
            ],
            out_specs=[
                pl.BlockSpec((None, None, tq, dv), lambda b, h, qi: (b, h, qi, 0)),  # output tile
                pl.BlockSpec((None, None, tq, Sk), lambda b, h, qi: (b, h, qi, 0)),  # attention tile
            ],
        ),
        compiler_params=pltpu.CompilerParams(
            dimension_semantics=("parallel", "parallel", "parallel"),
            vmem_limit_bytes=vmem_limit),
    )(mask_i8, Q, K, V)


def _reference(Q, K, V, mask):
    d_k = K.shape[3]
    scores = jnp.einsum("bhqd,bhkd->bhqk", Q, K) / math.sqrt(d_k)
    scores = jnp.where(mask[None, None], jnp.float32(-999999999.0), scores)
    attn = jax.nn.softmax(scores, axis=3)
    out = jnp.einsum("bhqk,bhkd->bhqd", attn, V)
    return out, attn


if __name__ == "__main__":
    # Exact (non-approx) softmax normalization -> only matmul-order rounding
    # differences vs the pure-JAX reference; 2e-3 gives ample margin.
    TOL = dict(atol=2e-3, rtol=2e-3)

    # Test 1: small shapes matching the module (B=2, H=4, S=8, D=32).
    B, H, S, D = 2, 4, 8, 32
    kq, kk, kv = jax.random.split(jax.random.PRNGKey(0), 3)
    Q = jax.random.normal(kq, (B, H, S, D), dtype=jnp.float32)
    K = jax.random.normal(kk, (B, H, S, D), dtype=jnp.float32)
    V = jax.random.normal(kv, (B, H, S, D), dtype=jnp.float32)
    mask = jnp.triu(jnp.ones((S, S), dtype=bool), k=1)  # causal: True = disallowed

    out, attn = scaled_dot_product_attention(Q, K, V, mask)
    jax.block_until_ready((out, attn))
    ref_out, ref_attn = _reference(Q, K, V, mask)
    assert jnp.allclose(out, ref_out, **TOL)
    assert jnp.allclose(attn, ref_attn, **TOL)

    # Test 2: exercise the q-tiled grid path (two q-tiles per (b, h)).
    B2, H2, S2, D2 = 1, 2, 128, 64
    kq2, kk2, kv2 = jax.random.split(jax.random.PRNGKey(0), 3)
    Q2 = jax.random.normal(kq2, (B2, H2, S2, D2), dtype=jnp.float32)
    K2 = jax.random.normal(kk2, (B2, H2, S2, D2), dtype=jnp.float32)
    V2 = jax.random.normal(kv2, (B2, H2, S2, D2), dtype=jnp.float32)
    mask2 = jnp.triu(jnp.ones((S2, S2), dtype=bool), k=1)

    out2, attn2 = scaled_dot_product_attention(Q2, K2, V2, mask2, q_block_size=64)
    jax.block_until_ready((out2, attn2))
    ref_out2, ref_attn2 = _reference(Q2, K2, V2, mask2)
    assert jnp.allclose(out2, ref_out2, **TOL)
    assert jnp.allclose(attn2, ref_attn2, **TOL)

    print("KERNEL_OK")
</pallas_src>

<mosaic_0001>
module attributes {stable_mosaic.version = 11 : i64} {
  func.func @_sdpa_kernel(%arg0: i32, %arg1: i32, %arg2: i32, %arg3: memref<8x8xi8, #tpu.memory_space<vmem>>, %arg4: memref<1x1x8x32xf32, #tpu.memory_space<vmem>>, %arg5: memref<1x1x8x32xf32, #tpu.memory_space<vmem>>, %arg6: memref<1x1x8x32xf32, #tpu.memory_space<vmem>>, %arg7: memref<1x1x8x32xf32, #tpu.memory_space<vmem>>, %arg8: memref<1x1x8x8xf32, #tpu.memory_space<vmem>>) attributes {dimension_semantics = [#tpu.dimension_semantics<parallel>, #tpu.dimension_semantics<parallel>, #tpu.dimension_semantics<parallel>], iteration_bounds = array<i64: 2, 4, 1>, scalar_prefetch = 0 : i64, scratch_operands = 0 : i64, tpu.core_type = #tpu.core_type<tc>, window_params = [{transform_indices = @transform_0, window_bounds = array<i64: 8, 8>}, {transform_indices = @transform_1, window_bounds = array<i64: 1, 1, 8, 32>}, {transform_indices = @transform_2, window_bounds = array<i64: 1, 1, 8, 32>}, {transform_indices = @transform_3, window_bounds = array<i64: 1, 1, 8, 32>}, {transform_indices = @transform_4, window_bounds = array<i64: 1, 1, 8, 32>}, {transform_indices = @transform_5, window_bounds = array<i64: 1, 1, 8, 8>}]} {
    %c0 = arith.constant 0 : index
    %c0_0 = arith.constant 0 : index
    %c0_1 = arith.constant 0 : index
    %c0_2 = arith.constant 0 : index
    %0 = vector.load %arg4[%c0, %c0_0, %c0_1, %c0_2] : memref<1x1x8x32xf32, #tpu.memory_space<vmem>>, vector<1x1x8x32xf32>
    %1 = vector.shape_cast %0 : vector<1x1x8x32xf32> to vector<8x32xf32>
    %c0_3 = arith.constant 0 : index
    %c0_4 = arith.constant 0 : index
    %c0_5 = arith.constant 0 : index
    %c0_6 = arith.constant 0 : index
    %2 = vector.load %arg5[%c0_3, %c0_4, %c0_5, %c0_6] : memref<1x1x8x32xf32, #tpu.memory_space<vmem>>, vector<1x1x8x32xf32>
    %3 = vector.shape_cast %2 : vector<1x1x8x32xf32> to vector<8x32xf32>
    %c0_7 = arith.constant 0 : index
    %c0_8 = arith.constant 0 : index
    %c0_9 = arith.constant 0 : index
    %c0_10 = arith.constant 0 : index
    %4 = vector.load %arg6[%c0_7, %c0_8, %c0_9, %c0_10] : memref<1x1x8x32xf32, #tpu.memory_space<vmem>>, vector<1x1x8x32xf32>
    %5 = vector.shape_cast %4 : vector<1x1x8x32xf32> to vector<8x32xf32>
    %cst = arith.constant 0.176776692 : f32
    %6 = vector.broadcast %cst : f32 to vector<8x32xf32>
    %7 = arith.mulf %1, %6 : vector<8x32xf32>
    %cst_11 = arith.constant dense<0.000000e+00> : vector<8x8xf32>
    %8 = tpu.matmul %7, %3, %cst_11 {dimension_numbers = #tpu.dot_dimension_numbers<[1], [1], [0], [0], [0, 0, 1, 0], [], []>} : vector<8x32xf32>, vector<8x32xf32>, vector<8x8xf32> -> vector<8x8xf32>
    %c0_12 = arith.constant 0 : index
    %c0_13 = arith.constant 0 : index
    %9 = vector.load %arg3[%c0_12, %c0_13] : memref<8x8xi8, #tpu.memory_space<vmem>>, vector<8x8xi8>
    %c0_i8 = arith.constant 0 : i8
    %10 = vector.broadcast %c0_i8 : i8 to vector<8x8xi8>
    %11 = arith.cmpi ne, %9, %10 : vector<8x8xi8>
    %cst_14 = arith.constant -1.000000e+09 : f32
    %12 = vector.broadcast %cst_14 : f32 to vector<8x8xf32>
    %13 = arith.select %11, %12, %8 : vector<8x8xi1>, vector<8x8xf32>
    %cst_15 = arith.constant dense<0xFF800000> : vector<8xf32>
    %14 = vector.multi_reduction <maximumf>, %13, %cst_15 [1] : vector<8x8xf32> to vector<8xf32>
    %15 = vector.shape_cast %14 : vector<8xf32> to vector<8x1xf32>
    %16 = vector.broadcast %15 : vector<8x1xf32> to vector<8x8xf32>
    %17 = arith.subf %13, %16 : vector<8x8xf32>
    %18 = math.exp %17 : vector<8x8xf32>
    %cst_16 = arith.constant dense<0.000000e+00> : vector<8xf32>
    %19 = vector.multi_reduction <add>, %18, %cst_16 [1] : vector<8x8xf32> to vector<8xf32>
    %20 = vector.shape_cast %19 : vector<8xf32> to vector<8x1xf32>
    %cst_17 = arith.constant 1.000000e+00 : f32
    %21 = vector.broadcast %cst_17 : f32 to vector<8x1xf32>
    %22 = arith.divf %21, %20 : vector<8x1xf32>
    %23 = vector.broadcast %22 : vector<8x1xf32> to vector<8x8xf32>
    %24 = arith.mulf %18, %23 : vector<8x8xf32>
    %c0_18 = arith.constant 0 : index
    %c0_19 = arith.constant 0 : index
    %c0_20 = arith.constant 0 : index
    %c0_21 = arith.constant 0 : index
    %25 = vector.load %arg8[%c0_18, %c0_19, %c0_20, %c0_21] : memref<1x1x8x8xf32, #tpu.memory_space<vmem>>, vector<1x1x8x8xf32>
    %26 = vector.shape_cast %25 : vector<1x1x8x8xf32> to vector<8x8xf32>
    %27 = vector.shape_cast %24 : vector<8x8xf32> to vector<1x1x8x8xf32>
    tpu.vector_store %arg8[%c0_18, %c0_19, %c0_20, %c0_21], %27 {strides = array<i32>} : memref<1x1x8x8xf32, #tpu.memory_space<vmem>>, vector<1x1x8x8xf32>,
    %cst_22 = arith.constant dense<0.000000e+00> : vector<8x32xf32>
    %28 = tpu.matmul %24, %5, %cst_22 {dimension_numbers = #tpu.dot_dimension_numbers<[1], [0], [0], [1], [0, 0, 1, 1], [], []>} : vector<8x8xf32>, vector<8x32xf32>, vector<8x32xf32> -> vector<8x32xf32>
    %c0_23 = arith.constant 0 : index
    %c0_24 = arith.constant 0 : index
    %c0_25 = arith.constant 0 : index
    %c0_26 = arith.constant 0 : index
    %29 = vector.load %arg7[%c0_23, %c0_24, %c0_25, %c0_26] : memref<1x1x8x32xf32, #tpu.memory_space<vmem>>, vector<1x1x8x32xf32>
    %30 = vector.shape_cast %29 : vector<1x1x8x32xf32> to vector<8x32xf32>
    %31 = vector.shape_cast %28 : vector<8x32xf32> to vector<1x1x8x32xf32>
    tpu.vector_store %arg7[%c0_23, %c0_24, %c0_25, %c0_26], %31 {strides = array<i32>} : memref<1x1x8x32xf32, #tpu.memory_space<vmem>>, vector<1x1x8x32xf32>,
    return
  }
  func.func @transform_0(%arg0: i32, %arg1: i32, %arg2: i32) -> (i32, i32) {
    %c0_i32 = arith.constant 0 : i32
    %c0_i32_0 = arith.constant 0 : i32
    return %arg2, %c0_i32 : i32, i32
  }
  func.func @transform_1(%arg0: i32, %arg1: i32, %arg2: i32) -> (i32, i32, i32, i32) {
    %c0_i32 = arith.constant 0 : i32
    %c0_i32_0 = arith.constant 0 : i32
    return %arg0, %arg1, %arg2, %c0_i32 : i32, i32, i32, i32
  }
  func.func @transform_2(%arg0: i32, %arg1: i32, %arg2: i32) -> (i32, i32, i32, i32) {
    %c0_i32 = arith.constant 0 : i32
    %c0_i32_0 = arith.constant 0 : i32
    %c0_i32_1 = arith.constant 0 : i32
    return %arg0, %arg1, %c0_i32, %c0_i32_0 : i32, i32, i32, i32
  }
  func.func @transform_3(%arg0: i32, %arg1: i32, %arg2: i32) -> (i32, i32, i32, i32) {
    %c0_i32 = arith.constant 0 : i32
    %c0_i32_0 = arith.constant 0 : i32
    %c0_i32_1 = arith.constant 0 : i32
    return %arg0, %arg1, %c0_i32, %c0_i32_0 : i32, i32, i32, i32
  }
  func.func @transform_4(%arg0: i32, %arg1: i32, %arg2: i32) -> (i32, i32, i32, i32) {
    %c0_i32 = arith.constant 0 : i32
    %c0_i32_0 = arith.constant 0 : i32
    return %arg0, %arg1, %arg2, %c0_i32 : i32, i32, i32, i32
  }
  func.func @transform_5(%arg0: i32, %arg1: i32, %arg2: i32) -> (i32, i32, i32, i32) {
    %c0_i32 = arith.constant 0 : i32
    %c0_i32_0 = arith.constant 0 : i32
    return %arg0, %arg1, %arg2, %c0_i32 : i32, i32, i32, i32
  }
}

</mosaic_0001>

<bundles_post_ra>
// kernel: tpu_custom_call.1
= control target key start
LH: loop header
LB: loop body
LE: loop exit
PB: predicated region body
PF: predicated region fallthrough
CT: control target
= control target key end

     0   :  { %s1600_s0 = inlined_call_operand.hbm [shape: s8[8,8], index: 0, kind: input, shape index: {}]   ;;  %s1601_s1 = inlined_call_operand.hbm [shape: f32[2,4,8,32], index: 1, kind: input, shape index: {}]   ;;  %s1602_s2 = inlined_call_operand.hbm [shape: f32[2,4,8,32], index: 2, kind: input, shape index: {}]   ;;  %s1603_s3 = inlined_call_operand.hbm [shape: f32[2,4,8,32], index: 3, kind: input, shape index: {}]   ;;  %s1604_s4 = inlined_call_operand.hbm [shape: f32[2,4,8,32], index: 4, kind: output, shape index: {0}]   ;;  %s1605_s5 = inlined_call_operand.hbm [shape: f32[2,4,8,8], index: 5, kind: output, shape index: {1}]  }
   0x1   :  { %1625 = sst [smem:[#allocation26_spill]] %s1601_s1 }
   0x2   :  { %11 = vsyncpa [#allocation3], 0 }
   0x3   :  { %12 = vsyncpa [#allocation6], 0 }
   0x4   :  { %14 = vsyncpa [#allocation6 + $0x1], 0 }
   0x5   :  { %15 = vsyncpa [#allocation9], 0 }
   0x6   :  { %17 = vsyncpa [#allocation9 + $0x1], 0 }
   0x7   :  { %18 = vsyncpa [#allocation4], 0 }
   0x8   :  { %20 = vsyncpa [#allocation4 + $0x1], 0 }
   0x9   :  { %21 = vsyncpa [#allocation12], 0 }
   0xa   :  { %23 = vsyncpa [#allocation12 + $0x1], 0  ;;  %s1239_s18 = smov 0   ;;  %s1241_s19 = smov 0  }
   0xb   :  { %s1243_s20 = smov 0   ;;  %s1245_s21 = smov 0  }
   0xc   :  { %s1247_s22 = smov 0   ;;  %s1249_s23 = smov 0  }
   0xd   :  { %s1251_s24 = smov 0   ;;  %s1253_s25 = smov 0  }
   0xe LB: > { %1626 = sst [smem:[#allocation18_spill]] %s1170_s18  ;;  %s44_s26 = sadd.s32 1, %s1190_s23  ;;  %s1198_s25 = sphi %s1253_s25, %s29_s25   ;;  %s1194_s24 = sphi %s1251_s24, %s1662_s24   ;;  %s1190_s23 = sphi %s1249_s23, %s1661_s23   ;;  %s1186_s22 = sphi %s1247_s22, %s1660_s22   ;;  %s1182_s21 = sphi %s1245_s21, %s1659_s21   ;;  %s1178_s20 = sphi %s1243_s20, %s1665_s20   ;;  %s1174_s19 = sphi %s1241_s19, %s1664_s19   ;;  %s1170_s18 = sphi %s1239_s18, %s1663_s18  }
   0xf   : > { %1627 = sst [smem:[#allocation19_spill]] %s1190_s23  ;;  %s48_s27 = sadd.s32 1, %s1194_s24 }
  0x10   : > { %1628 = sst [smem:[#allocation20_spill]] %s1194_s24  ;;  %p46_p0 = scmp.ge.s32.totalorder %s44_s26, 4 }
  0x11   : > { %1629 = sst [smem:[#allocation21_spill]] %s1198_s25  ;;  %s85_s28 = sadd.s32 1, %s1178_s20 }
  0x12   : > { %p1608_p1 = scmp.ne.s32.totalorder %s1178_s20, %s1174_s19  ;;  %p93_p2 = scmp.eq.s32.totalorder %s1198_s25, 0 }
  0x13   : > { %s1667_s26 = smov (%p46_p0, %s44_s26), 0  ;;  %s1669_s27 = smov (!%p46_p0, %s48_s27), %s1194_s24 }
  0x14   : > { %1630 = sst [smem:[#allocation22_spill]] %s1667_s26  ;;  %s79_s29 = ssub.s32 %s1190_s23, %s1667_s26 }
  0x15   : > { %p1293_p3 = por %p93_p2, %p1608_p1  ;;  %p50_p4 = scmp.ge.s32.totalorder %s1669_s27, 2 }
  0x16   : > { %p867_p5 = scmp.lt.s32.totalorder %s1198_s25, 8  ;;  %s251_s6 = sand.u32 1, %s1198_s25  }
  0x17   : > { %s1671_s27 = smov (%p50_p4, %s1669_s27), 0  ;;  %s1609_s7 = sand.u32 1, %s1178_s20  }
  0x18   : > { %1632 = sst [smem:[#allocation23_spill]] %s1671_s27  ;;  %s78_s8 = ssub.s32 %s1194_s24, %s1671_s27 }
  0x19   : > { %s1306_s9 = sshll.u32 %s1609_s7, 3  ;;  %s80_s10 = sor.u32 %s79_s29, %s78_s8 }
  0x1a   : > { %p83_p6 = scmp.eq.s32.totalorder %s80_s10, 0  ;;  %s791_s11 = sshll.u32 %s1194_s24, 2 }
  0x1b   : > { %s261_s12 = sadd.s32 %s1190_s23, %s791_s11  ;;  %s255_s13 = scalar_lea.vmem [#allocation5], %s1306_s9 }
  0x1c   : > { %s265_s14 = sshll.u32 %s255_s13, 4  ;;  %s1314_s16 = sshll.u32 %s261_s12, 7  ;;  %s1316_s14 = int_to_ptr.vmem [resolvable:$true] %s265_s14 }
  0x1d   : > { %s1312_s15 = scalar_select %p83_p6, %s1178_s20, %s85_s28  }
  0x1e   : > { %s1634_s1 = sld [smem:[#allocation26_spill]]  ;;  %p1328_p7 = pnand %p867_p5, %p1293_p3 }
  0x1f   : > { %1633 = sst [smem:[#allocation24_spill]] %s1312_s15  ;;  %s1332_s28 = scalar_lea.sflag [#allocation6], %s251_s6 }
  0x20   : > { %s1635_s29 = scalar_select %p1328_p7, 1, 0 }
  0x21   : > { %p1338_p9 = pneg %p1328_p7 }
  0x23   : > { %s1636_s26 = scalar_select %p1338_p9, 1, 0 }
  0x24   : > { %s1322_s27 = scalar_lea.hbm %s1634_s1, %s1314_s16  ;;  %s947_s11 = scalar_lea.hbm %s1634_s1, 1024 }
  0x25   : > { %s942_s8 = scalar_lea.hbm %s1322_s27, 128  ;;  %p948_p12 = scmp.lt.u32.totalorder %s1322_s27, %s1634_s1 }
  0x26   : > { %p943_p8 = scmp.ne.s32.totalorder %s1322_s27, %s942_s8  ;;  %p949_p13 = scmp.lt.u32.totalorder %s947_s11, %s942_s8 }
  0x27   : > { %p951_p2 = scmp.lt.u32.totalorder %s942_s8, %s1322_s27 }
  0x28   : > { %p945_p10 = pnand %p1338_p9, %p943_p8  ;;  %p950_p0 = por %p949_p13, %p948_p12 }
  0x2a   : > { %p946_p11 = pneg %p945_p10  ;;  %p952_p3 = por %p951_p2, %p950_p0 }
  0x2c   : > { %p953_p4 = pnand %p952_p3, %p946_p11 }
  0x2e   : > { %956 = shalt.err (!%p953_p4)
}
  0x2f   : > { %s957_s6 = scalar_lea.vmem %s1316_s14, 128  ;;  %s1200_s17 = smov [#allocation5]  }
  0x30   : > { %p958_p5 = scmp.ne.s32.totalorder %s1316_s14, %s957_s6  ;;  %s962_s30 = sshll.u32 %s1200_s17, 4  ;;  %s963_s30 = int_to_ptr.vmem [resolvable:$false] %s962_s30 }
  0x31   : > { %s964_s10 = scalar_lea.vmem %s963_s30, 256  ;;  %p965_p10 = scmp.lt.s32.totalorder %s1316_s14, %s963_s30 }
  0x32   : > { %p960_p6 = pnand %p958_p5, %p1338_p9  ;;  %p966_p1 = scmp.lt.s32.totalorder %s964_s10, %s957_s6 }
  0x34   : > { %p961_p8 = pneg %p960_p6  ;;  %p967_p12 = por %p966_p1, %p965_p10 }
  0x36   : > { %p968_p13 = pnand %p967_p12, %p961_p8 }
  0x38   : > { %971 = shalt.err (!%p968_p13)
}
  0x39   : > { %852 = dma.hbm_to_vmem [thread:$0]  (!%p1328_p7), %s1322_s27, 128, %s1316_s14, %s1332_s28  }
  0x3a   : > { %s1363_s8 = sadd.s32 4294967295, %s1198_s25   ;;  %s786_s11 = sadd.s32 4294967294, %s1198_s25  }
  0x3b   : > { %p98_p1 = scmp.ne.s32.totalorder %s1174_s19, %s1170_s18  ;;  %p1613_p11 = scmp.eq.s32.totalorder %s1363_s8, 0 }
  0x3c   : > { %p182_p0 = scmp.eq.s32.totalorder %s1363_s8, 7  ;;  %p188_p2 = scmp.eq.s32.totalorder %s786_s11, 7 }
  0x3d   : > { %p787_p3 = scmp.ge.s32.totalorder %s1198_s25, 1  ;;  %p1373_p4 = por %p1613_p11, %p98_p1 }
  0x3e   : > { %p1638_p5 = scmp.ne.s32.totalorder %s1178_s20, %s1174_s19  ;;  %p1384_p8 = por %p188_p2, %p98_p1 }
  0x3f   : > { %s1637_s12 = scalar_select %p1373_p4, 1, 0 }
  0x40   : > { %p1380_p6 = por %p182_p0, %p1638_p5  ;;  %p225_p10 = scmp.lt.s32.totalorder %s1198_s25, 9 }
  0x41   : > { %s1640_s14 = scalar_select %p1384_p8, 1, 0 }
  0x42   : > { %s1639_s27 = scalar_select %p1380_p6, 1, 0 }
  0x43   : > { %1641 = sst [smem:[#allocation25_spill]] %s1640_s14  ;;  %p1389_p12 = pnand %p787_p3, %p225_p10 }
  0x44   : > { %s1201_s6 = smov [#allocation2]   ;;  %s1401_s11 = scalar_lea.hbm %s1602_s2, %s1314_s16 }
  0x45   : > { %s1642_s13 = scalar_select %p1389_p12, 1, 0 }
  0x46   : > { %s240_s17 = sshll.u32 %s1201_s6, 4  ;;  %p845_p13 = pneg %p1389_p12  ;;  %s1393_s17 = int_to_ptr.vmem [resolvable:$true] %s240_s17 }
  0x47   : > { %s276_s7 = scalar_lea.vmem [#allocation7], %s1306_s9  ;;  %s972_s6 = scalar_lea.hbm %s1401_s11, 128 }
  0x48   : > { %s285_s1 = sshll.u32 %s276_s7, 4  ;;  %p1406_p1 = pnand %p845_p13, %p1613_p11  ;;  %s286_s1 = int_to_ptr.vmem [resolvable:$true] %s285_s1 }
  0x49   : > { %p973_p0 = scmp.ne.s32.totalorder %s1401_s11, %s972_s6  ;;  %s977_s23 = scalar_lea.hbm %s1602_s2, 1024 }
  0x4a   : > { %s1643_s24 = scalar_select %p1406_p1, 1, 0 }
  0x4b   : > { %p975_p2 = pnand %p973_p0, %p1338_p9  ;;  %p978_p5 = scmp.lt.u32.totalorder %s1401_s11, %s1602_s2 }
  0x4c   : > { %p979_p10 = scmp.lt.u32.totalorder %s977_s23, %s972_s6  ;;  %p981_p13 = scmp.lt.u32.totalorder %s972_s6, %s1401_s11 }
  0x4d   : > { %p976_p3 = pneg %p975_p2 }
  0x4e   : > { %p980_p8 = por %p979_p10, %p978_p5 }
  0x50   : > { %p982_p11 = por %p981_p13, %p980_p8 }
  0x52   : > { %p983_p6 = pnand %p982_p11, %p976_p3 }
  0x54   : > { %986 = shalt.err (!%p983_p6)
}
  0x55   : > { %s987_s7 = scalar_lea.vmem %s286_s1, 128  ;;  %s1202_s18 = smov [#allocation7]  }
  0x56   : > { %p988_p4 = scmp.ne.s32.totalorder %s286_s1, %s987_s7  ;;  %s992_s25 = sshll.u32 %s1202_s18, 4  ;;  %s993_s25 = int_to_ptr.vmem [resolvable:$false] %s992_s25 }
  0x57   : > { %s994_s30 = scalar_lea.vmem %s993_s25, 256  ;;  %p995_p12 = scmp.lt.s32.totalorder %s286_s1, %s993_s25 }
  0x58   : > { %p990_p0 = pnand %p988_p4, %p1338_p9  ;;  %p996_p1 = scmp.lt.s32.totalorder %s994_s30, %s987_s7 }
  0x5a   : > { %p991_p2 = pneg %p990_p0  ;;  %p997_p7 = por %p996_p1, %p995_p12 }
  0x5c   : > { %p998_p5 = pnand %p997_p7, %p991_p2 }
  0x5e   : > { %1001 = shalt.err (!%p998_p5)
}
  0x5f   : > { %p1644_p10 = scmp.ne.s32.totalorder %s1635_s29, 0  ;;  %s1002_s14 = scalar_lea.hbm %s1600_s0, 32 }
  0x60   : > { %p1003_p11 = scmp.ne.s32.totalorder %s1600_s0, %s1002_s14  ;;  %p1645_p4 = scmp.ne.s32.totalorder %s1643_s24, 0 }
  0x61   : > { %855 = dma.hbm_to_vmem [thread:$0]  (!%p1644_p10), %s1401_s11, 128, %s286_s1, %s1332_s28  }
  0x62   : > { %p1004_p6 = pneg %p1645_p4  ;;  %p1009_p7 = scmp.lt.u32.totalorder %s1002_s14, %s1600_s0 }
  0x64   : > { %p1005_p8 = pnand %p1004_p6, %p1003_p11 }
  0x66   : > { %p1006_p12 = pneg %p1005_p8 }
  0x68   : > { %p1011_p1 = pnand %p1009_p7, %p1006_p12 }
  0x6a   : > { %1014 = shalt.err (!%p1011_p1)
}
  0x6b   : > { %s1015_s1 = scalar_lea.vmem %s1393_s17, 32  ;;  %p1023_p2 = scmp.lt.s32.totalorder %s1393_s17, %s1393_s17 }
  0x6c   : > { %p1016_p3 = scmp.ne.s32.totalorder %s1393_s17, %s1015_s1  ;;  %p1024_p5 = scmp.lt.s32.totalorder %s1015_s1, %s1015_s1 }
  0x6e   : > { %p1018_p13 = pnand %p1016_p3, %p1004_p6  ;;  %p1025_p10 = por %p1024_p5, %p1023_p2 }
  0x70   : > { %p1019_p0 = pneg %p1018_p13 }
  0x72   : > { %p1026_p9 = pnand %p1025_p10, %p1019_p0 }
  0x74   : > { %1029 = shalt.err (!%p1026_p9)
}
  0x75   : > { %848 = dma.hbm_to_vmem [thread:$0]  (!%p1645_p4), %s1600_s0, 32, %s1393_s17, [#allocation3]  }
  0x76   : > { %s1453_s23 = scalar_lea.hbm %s1603_s3, %s1314_s16  ;;  %s296_s15 = scalar_lea.vmem [#allocation8], %s1306_s9 }
  0x77   : > { %s305_s24 = sshll.u32 %s296_s15, 4  ;;  %s1646_s14 = sand.u32 1, %s1178_s20   ;;  %s306_s24 = int_to_ptr.vmem [resolvable:$true] %s305_s24 }
  0x78   : > { %s293_s6 = scalar_lea.sflag [#allocation9], %s1646_s14  ;;  %s1030_s10 = scalar_lea.hbm %s1453_s23, 128 }
  0x79   : > { %p1031_p9 = scmp.ne.s32.totalorder %s1453_s23, %s1030_s10  ;;  %p1647_p10 = scmp.ne.s32.totalorder %s1636_s26, 0 }
  0x7a   : > { %s1035_s25 = scalar_lea.hbm %s1603_s3, 1024  ;;  %p1036_p4 = scmp.lt.u32.totalorder %s1453_s23, %s1603_s3 }
  0x7b   : > { %p1033_p11 = pnand %p1031_p9, %p1647_p10  ;;  %p1037_p8 = scmp.lt.u32.totalorder %s1035_s25, %s1030_s10 }
  0x7c   : > { %p1039_p7 = scmp.lt.u32.totalorder %s1030_s10, %s1453_s23 }
  0x7d   : > { %p1034_p6 = pneg %p1033_p11  ;;  %p1038_p12 = por %p1037_p8, %p1036_p4 }
  0x7f   : > { %p1040_p1 = por %p1039_p7, %p1038_p12 }
  0x81   : > { %p1041_p3 = pnand %p1040_p1, %p1034_p6 }
  0x83   : > { %1044 = shalt.err (!%p1041_p3)
}
  0x84   : > { %s1045_s9 = scalar_lea.vmem %s306_s24, 128  ;;  %s1203_s28 = smov [#allocation8]  }
  0x85   : > { %p1046_p13 = scmp.ne.s32.totalorder %s306_s24, %s1045_s9  ;;  %s1050_s11 = sshll.u32 %s1203_s28, 4  ;;  %s1051_s11 = int_to_ptr.vmem [resolvable:$false] %s1050_s11 }
  0x86   : > { %s1052_s7 = scalar_lea.vmem %s1051_s11, 256  ;;  %p1053_p5 = scmp.lt.s32.totalorder %s306_s24, %s1051_s11 }
  0x87   : > { %p1048_p0 = pnand %p1046_p13, %p1647_p10  ;;  %p1054_p9 = scmp.lt.s32.totalorder %s1052_s7, %s1045_s9 }
  0x89   : > { %p1049_p2 = pneg %p1048_p0  ;;  %p1055_p11 = por %p1054_p9, %p1053_p5 }
  0x8b   : > { %p1056_p4 = pnand %p1055_p11, %p1049_p2 }
  0x8d   : > { %1059 = shalt.err (!%p1056_p4)
}
  0x8e   : > { %p1648_p8 = scmp.ne.s32.totalorder %s1635_s29, 0  ;;  %p1649_p6 = scmp.ne.s32.totalorder %s1642_s13, 0 }
  0x8f   : > { %p1650_p12 = scmp.eq.s32.totalorder (!%p1649_p6), %s1363_s8, 0 }
  0x90   : > { %858 = dma.hbm_to_vmem [thread:$0]  (!%p1648_p8), %s1453_s23, 128, %s306_s24, %s293_s6  }
  0x91   : > { %314 = sbr.rel (%p1649_p6) target bundleno = 920 (0x398), region = 36 }
  0x98   : > { %1149 = dma.done.wait (%p1650_p12), [#allocation3], 32   ;;  %p1651_p10 = pmov %p1650_p12 }
  0x99   : > { %s320_s26 = sand.u32 1, %s1363_s8   ;;  %s1483_s30 = sand.u32 1, %s1174_s19  }
  0x9a   : > { %1151 = vsyncadd (%p1651_p10), [#allocation3], 4294967264  ;;  %s1486_s15 = sshll.u32 %s1483_s30, 3  ;;  %s321_s29 = scalar_lea.sflag [#allocation6], %s320_s26 }
  0x9b   : > { %s324_s23 = scalar_lea.vmem [#allocation5], %s1486_s15  ;;  %p1652_p7 = scmp.ne.s32.totalorder %s1637_s12, 0 }
  0x9d   : > { %1153 = dma.done.wait (%p1652_p7), %s321_s29, 256  }
  0x9e   : > { %1155 = vsyncadd (%p1652_p7), %s321_s29, 4294967040  ;;  %s333_s13 = scalar_lea.vmem [#allocation7], %s1486_s15  ;;  %s339_s24 = scalar_lea.sflag [#allocation9], %s1483_s30 }
  0x9f   : > { %s342_s8 = scalar_lea.vmem [#allocation8], %s1486_s15 }
  0xa0   : > { %1157 = dma.done.wait (%p1652_p7), %s339_s24, 128  }
  0xa1   : > { %1159 = vsyncadd (%p1652_p7), %s339_s24, 4294967168  ;;  %v1204_v0 = vmov 0.0   ;;  %vm1205_vm0 = vmmov 0   ;;  %vm390_vm1 = vcmask 261120   ;;  %v387_v1 = vld [vmem:[%s333_s13] sm:$0xff]  ;;  %v386_v2 = vld [vmem:[%s324_s23] sm:$0xff] }
  0xa2   : > { %821 = vmatprep.subr.mxu0 %v1204_v0  ;;  %823 = vmatprep.mubr.msk.f32.mxu0 %vm1205_vm0, %v1204_v0  ;;  %v389_v3 = vmul.f32 0.17677669, %v386_v2  ;;  %v467_v4 = vld [vmem:[#allocation2] sm:$0x3]  ;;  %v1206_v5 = vmov 0   ;;  %vm473_vm4 = vcmask 64512  }
  0xa3   : > { %826 = vmatprep.subr.mxu1 %v1204_v0  ;;  %828 = vmatprep.mubr.msk.f32.mxu1 %vm1205_vm0, %v1204_v0  ;;  %vm468_vm2 = vnez %v467_v4  ;;  %v388_v17 = vld [vmem:[%s342_s8] sm:$0xff]  ;;  %s383_s12 = scalar_lea.vmem [#allocation11], %s1486_s15  ;;  %s811_s14 = sshll.u32 %s1186_s22, 2 }
  0xa4   : > { %822 = vmatpush3.xpose.msk.msra.mxu0 %vm390_vm1, %v387_v1  ;;  %v469_v6 = vsel %vm468_vm2, 16843009, %v1206_v5  ;;  %827 = vmatpush3.msra.mxu1 %v388_v17  ;;  %s1511_s6 = sadd.s32 %s1182_s21, %s811_s14  ;;  %s599_s16 = sshll.u32 %s383_s12, 4  ;;  %s600_s16 = int_to_ptr.vmem [resolvable:$true] %s599_s16 }
  0xa5   : > { %v470_v7 = vunpack.c.0.s8 %v469_v6  ;;  %s812_s10 = sshll.u32 %s1511_s6, 7  ;;  %s567_s1 = scalar_lea.sflag [#allocation12], %s1483_s30 }
  0xa6   : > { %s1519_s25 = scalar_lea.hbm %s1605_s5, %s812_s10  ;;  %s1060_s9 = scalar_lea.vmem %s600_s16, 128 }
  0xa7   : > { %824 = vmatmul.mubr.msk.f32.vlgmr.msra.gmra.mrb[0].mxu0 %vm390_vm1, %v389_v3  ;;  %vm471_vm3 = vcmp.ne.s32.totalorder %v470_v7, 0  ;;  %p1061_p1 = scmp.ne.s32.totalorder %s600_s16, %s1060_s9  ;;  %p1653_p3 = scmp.ne.s32.totalorder %s1639_s27, 0 }
  0xa8   : > { %s1207_s22 = smov [#allocation11]  }
  0xa9   : > { %p1062_p13 = pnand %p1061_p1, %p1653_p3  ;;  %s1064_s21 = sshll.u32 %s1207_s22, 4  ;;  %s1065_s21 = int_to_ptr.vmem [resolvable:$false] %s1064_s21 }
  0xaa   : > { %s1066_s28 = scalar_lea.vmem %s1065_s21, 256  ;;  %p1067_p2 = scmp.lt.s32.totalorder %s600_s16, %s1065_s21 }
  0xab   : > { %p1063_p0 = pneg %p1062_p13  ;;  %p1068_p5 = scmp.lt.s32.totalorder %s1066_s28, %s1060_s9 }
  0xad   : > { %p1069_p9 = por %p1068_p5, %p1067_p2 }
  0xaf   : > { %p1070_p11 = pnand %p1069_p9, %p1063_p0 }
 0x17a   : > { %v463_v8 = vpop.f32.mrb[0].mxu0 }
 0x17b   : > { %v472_v9 = vsel %vm471_vm3, -1e+09, %v463_v8  ;;  %v825_v10 = vpop.f32.mrb[1].mxu0 }
 0x17c   : > { %v474_v11 = vsel %vm473_vm4, %v472_v9, -inf }
 0x17d   : > { %475 = vmax.xlane.f32.xlu0 %v474_v11 }
 0x20a   : > { %v476_v12 = vpop.xlane.xlu0 %475 }
 0x20b   : > { %v477_v13 = vsub.f32 %v472_v9, %v476_v12 }
 0x20d   : > { %v478_v14 = vmul.f32 1.442695, %v477_v13 }
 0x20f   : > { %938 = vpow2.f32 %v478_v14 }
 0x219   : > { %v939_v15 = vpop.eup %938 }
 0x21a   : > { %v480_v16 = vsel %vm473_vm4, %v939_v15, 0.0 }
 0x21b   : > { %481 = vadd.xlane.f32.xlu0 %v480_v16 }
 0x2a8   : > { %v482_v18 = vpop.xlane.xlu0 %481 }
 0x2a9   : > { %940 = vrcp.f32 %v482_v18 }
 0x2b3   : > { %v941_v19 = vpop.eup %940 }
 0x2b4   : > { %v485_v20 = vmul.f32 %v941_v19, %v939_v15 }
 0x2b6   : > { %829 = vmatmul.mubr.msk.f32.vlgmr.msra.gmra.mrb[0].mxu1 %vm473_vm4, %v485_v20  ;;  %486 = vst.msk [vmem:[%s383_s12] sm:$0xff] %vm473_vm4, %v485_v20 }
 0x2b7   : > { %1073 = shalt.err (!%p1070_p11)
}
 0x2b8   : > { %s1074_s11 = scalar_lea.hbm %s1519_s25, 128  ;;  %s1078_s29 = scalar_lea.hbm %s1605_s5, 1024 }
 0x2b9   : > { %p1075_p4 = scmp.ne.s32.totalorder %s1519_s25, %s1074_s11  ;;  %p1079_p12 = scmp.lt.u32.totalorder %s1519_s25, %s1605_s5 }
 0x2ba   : > { %p1080_p10 = scmp.lt.u32.totalorder %s1078_s29, %s1074_s11  ;;  %p1082_p1 = scmp.lt.u32.totalorder %s1074_s11, %s1519_s25 }
 0x2bb   : > { %p1076_p8 = pnand %p1075_p4, %p1653_p3 }
 0x2bc   : > { %p1081_p7 = por %p1080_p10, %p1079_p12 }
 0x2bd   : > { %p1077_p6 = pneg %p1076_p8 }
 0x2be   : > { %p1083_p13 = por %p1082_p1, %p1081_p7 }
 0x2c0   : > { %p1084_p0 = pnand %p1083_p13, %p1077_p6 }
 0x2c2   : > { %1087 = shalt.err (!%p1084_p0)
}
 0x2c3   : > { %842 = dma.vmem_to_hbm [thread:$0]  (%p1653_p3), %s600_s16, 128, %s1519_s25, %s567_s1  }
 0x2c4   : > { %s376_s24 = scalar_lea.vmem [#allocation10], %s1486_s15  ;;  %s1545_s17 = scalar_lea.hbm %s1604_s4, %s812_s10 }
 0x2c5   : > { %s583_s8 = sshll.u32 %s376_s24, 4  ;;  %s562_s18 = scalar_lea.sflag [#allocation4], %s1483_s30  ;;  %s1547_s8 = int_to_ptr.vmem [resolvable:$true] %s583_s8 }
 0x2c6   : > { %s1088_s9 = scalar_lea.vmem %s1547_s8, 128  ;;  %s1208_s15 = smov [#allocation10]  }
 0x2c7   : > { %p1089_p2 = scmp.ne.s32.totalorder %s1547_s8, %s1088_s9  ;;  %s1092_s6 = sshll.u32 %s1208_s15, 4  ;;  %s1093_s6 = int_to_ptr.vmem [resolvable:$false] %s1092_s6 }
 0x2c8   : > { %s1094_s10 = scalar_lea.vmem %s1093_s6, 256  ;;  %p1095_p11 = scmp.lt.s32.totalorder %s1547_s8, %s1093_s6 }
 0x2c9   : > { %p1090_p5 = pnand %p1089_p2, %p1653_p3  ;;  %p1096_p4 = scmp.lt.s32.totalorder %s1094_s10, %s1088_s9 }
 0x2cb   : > { %p1091_p9 = pneg %p1090_p5  ;;  %p1097_p8 = por %p1096_p4, %p1095_p11 }
 0x2cd   : > { %p1098_p6 = pnand %p1097_p8, %p1091_p9 }
 0x389   : > { %v556_v21 = vpop.f32.mrb[0].mxu1 }
 0x38a   : > { %560 = vst.msk [vmem:[%s376_s24] sm:$0xff] %vm390_vm1, %v556_v21  ;;  %v830_v22 = vpop.f32.mrb[1].mxu1 }
 0x38b   : > { %1101 = shalt.err (!%p1098_p6)
}
 0x38c   : > { %s1102_s30 = scalar_lea.hbm %s1545_s17, 128  ;;  %s1106_s1 = scalar_lea.hbm %s1604_s4, 1024 }
 0x38d   : > { %p1103_p12 = scmp.ne.s32.totalorder %s1545_s17, %s1102_s30  ;;  %p1107_p1 = scmp.lt.u32.totalorder %s1545_s17, %s1604_s4 }
 0x38e   : > { %p1108_p13 = scmp.lt.u32.totalorder %s1106_s1, %s1102_s30  ;;  %p1110_p2 = scmp.lt.u32.totalorder %s1102_s30, %s1545_s17 }
 0x38f   : > { %p1104_p10 = pnand %p1103_p12, %p1653_p3 }
 0x390   : > { %p1109_p0 = por %p1108_p13, %p1107_p1 }
 0x391   : > { %p1105_p7 = pneg %p1104_p10 }
 0x392   : > { %p1111_p5 = por %p1110_p2, %p1109_p0 }
 0x394   : > { %p1112_p9 = pnand %p1111_p5, %p1105_p7 }
 0x396   : > { %1115 = shalt.err (!%p1112_p9)
}
 0x397   : > { %841 = dma.vmem_to_hbm [thread:$0]  (%p1653_p3), %s1547_s8, 128, %s1545_s17, %s562_s18  }
 0x398 PF: > { %s1654_s28 = sld [smem:[#allocation21_spill]]  ;;  %s1655_s11 = sld [smem:[#allocation18_spill]] }
 0x399   : > { %s1656_s7 = sld [smem:[#allocation25_spill]] }
 0x39e   : > { %p869_p11 = scmp.ge.s32.totalorder %s1654_s28, 2  ;;  %s611_s26 = sand.u32 1, %s1655_s11  }
 0x39f   : > { %p1657_p4 = scmp.ne.s32.totalorder %s1656_s7, 0  ;;  %s612_s29 = scalar_lea.sflag [#allocation4], %s611_s26 }
 0x3a1   : > { %p860_p8 = pnand %p869_p11, %p1657_p4 }
 0x3a3   : > { %1161 = dma.done.wait (!%p860_p8), %s612_s29, 128  }
 0x3a4   : > { %1163 = vsyncadd (!%p860_p8), %s612_s29, 4294967168  ;;  %s621_s23 = scalar_lea.sflag [#allocation12], %s611_s26 }
 0x3a5   : > { %1165 = dma.done.wait (!%p860_p8), %s621_s23, 128  }
 0x3a6   : > { %1167 = vsyncadd (!%p860_p8), %s621_s23, 4294967168  ;;  %s29_s25 = sadd.s32 1, %s1654_s28   ;;  %s1658_s27 = sld [smem:[#allocation24_spill]] }
 0x3a7   : > { %p26_p6 = scmp.ge.s32.totalorder %s29_s25, 10   ;;  %s1659_s21 = sld [smem:[#allocation19_spill]] }
 0x3a8   : > { %s1660_s22 = sld [smem:[#allocation20_spill]]  ;;  %s1661_s23 = sld [smem:[#allocation22_spill]] }
 0x3a9   : > { %s1662_s24 = sld [smem:[#allocation23_spill]]  ;;  %s1663_s18 = smov %s1174_s19 }
 0x3aa   : > { %s1664_s19 = smov %s1178_s20  ;;  %28 = sbr.rel (!%p26_p6) target bundleno = 14 (0xe), region = 128 }
 0x3ac   : > { %s1665_s20 = smov %s1658_s27 }
 0x3b1   :  { %626 = vsyncpa [#allocation3], 1 }
 0x3b2   :  { %628 = vsyncpa [#allocation3 + $0x1], 1 }
 0x3b3   :  { %629 = vsyncpa [#allocation6], 1 }
 0x3b4   :  { %631 = vsyncpa [#allocation6 + $0x1], 1 }
 0x3b5   :  { %632 = vsyncpa [#allocation9], 1 }
 0x3b6   :  { %634 = vsyncpa [#allocation9 + $0x1], 1 }
 0x3b7   :  { %635 = vsyncpa [#allocation4], 1 }
 0x3b8   :  { %637 = vsyncpa [#allocation4 + $0x1], 1 }
 0x3b9   :  { %638 = vsyncpa [#allocation12], 1 }
 0x3ba   :  { %640 = vsyncpa [#allocation12 + $0x1], 1 }

</bundles_post_ra>
